<compile_context>
chip_gen: v7x
topology: tpu7x:2x2x1
jax: 0.10.0
libtpu: 0.0.40
codegen_flags: <defaults>
</compile_context>

<pallas_src>
import functools

import jax
import jax.numpy as jnp
from jax import lax
from jax.experimental import pallas as pl
from jax.experimental.pallas import tpu as pltpu


def _round_up(n, m):
    return ((n + m - 1) // m) * m


# ----------------------------------------------------------------------------
# Pallas kernel: fused  relu(x @ W1^T + b1) @ W2 + b2   (one batch tile / step)
# ----------------------------------------------------------------------------
def _mlp_kernel(x_ref, w1_ref, b1_ref, w2_ref, b2_ref, o_ref):
    # x_ref : [TB, Dp]   w1_ref : [Hp, Dp]  (natural [out, in], sublane-padded)
    # b1_ref: [1, Hp]    w2_ref : [Hp, Cp]  ([in, out], lane-dense Cp)
    # b2_ref: [1, Cp]    o_ref  : [TB, Cp]
    x = x_ref[...]
    # fc1: contract on D for both operands (x @ w1^T) -> [TB, Hp] on the MXU;
    # no transposed / H-padded copy of W1 ever exists in HBM.
    h = lax.dot_general(
        x, w1_ref[...],
        dimension_numbers=(((1,), (1,)), ((), ())),
        preferred_element_type=jnp.float32,
    )
    h = jnp.maximum(h + b1_ref[...], 0.0)                 # bias + ReLU on the VPU
    # fc2: [TB, Hp] @ [Hp, Cp] -> [TB, Cp]  (lane-dense output block)
    out = jnp.dot(h, w2_ref[...], preferred_element_type=jnp.float32)
    o_ref[...] = (out + b2_ref[...]).astype(o_ref.dtype)


# ----------------------------------------------------------------------------
# One-time weight layout / padding (call OUTSIDE the per-step forward path)
# ----------------------------------------------------------------------------
def prepare_params(w1, b1, w2, b2):
    """w1: [H, D] (PyTorch Linear layout [out, in]), b1: [H], w2: [C, H], b2: [C]."""
    H, D = w1.shape
    C = w2.shape[0]
    Dp = _round_up(D, 128)   # lane axis of x / w1
    Hp = _round_up(H, 8)     # sublane-only padding: W1 stays ~raw size in HBM
    Cp = _round_up(C, 128)   # lane-dense output block

    w1_p = jnp.zeros((Hp, Dp), jnp.float32).at[:H, :D].set(w1)    # natural [out, in]
    b1_p = jnp.zeros((1, Hp), jnp.float32).at[0, :H].set(b1)
    w2_p = jnp.zeros((Hp, Cp), jnp.float32).at[:H, :C].set(w2.T)  # -> [in, out]
    b2_p = jnp.zeros((1, Cp), jnp.float32).at[0, :C].set(b2)
    return w1_p, b1_p, w2_p, b2_p


# ----------------------------------------------------------------------------
# Jitted forward: pad x, one fused pallas_call, slice off padding
# ----------------------------------------------------------------------------
@functools.partial(jax.jit, static_argnames=("num_classes",))
def neural_net_forward(x, w1_p, b1_p, w2_p, b2_p, *, num_classes):
    """Forward pass matching PyTorch NeuralNet.forward (expects padded params)."""
    B, D = x.shape
    Hp, Dp = w1_p.shape
    Cp = w2_p.shape[1]

    # Batch tiling: single block at toy sizes; 128-row tiles on a "parallel"
    # grid axis (shards across both TensorCores on v7x) once the batch grows.
    # (For very large batches / inputs, a K-reduction grid + VMEM accumulator
    #  would be the next step; not needed at these sizes.)
    TB = min(_round_up(B, 8), 128)
    Bp = _round_up(B, TB)
    num_b = Bp // TB

    # Only the activations are padded per call (lane/sublane alignment; zeros
    # are mathematically inert through both matmuls, bias adds and ReLU).
    x_p = jnp.zeros((Bp, Dp), jnp.float32).at[:B, :D].set(x)

    out_p = pl.pallas_call(
        _mlp_kernel,
        out_shape=jax.ShapeDtypeStruct((Bp, Cp), jnp.float32),
        grid_spec=pltpu.PrefetchScalarGridSpec(
            num_scalar_prefetch=0,
            grid=(num_b,),
            in_specs=[
                pl.BlockSpec((TB, Dp), lambda i: (i, 0)),   # x tile
                pl.BlockSpec((Hp, Dp), lambda i: (0, 0)),   # W1 (grid-invariant)
                pl.BlockSpec((1, Hp), lambda i: (0, 0)),    # b1
                pl.BlockSpec((Hp, Cp), lambda i: (0, 0)),   # W2
                pl.BlockSpec((1, Cp), lambda i: (0, 0)),    # b2
            ],
            out_specs=pl.BlockSpec((TB, Cp), lambda i: (i, 0)),
        ),
        compiler_params=pltpu.CompilerParams(
            dimension_semantics=("parallel",),
        ),
    )(x_p, w1_p, b1_p, w2_p, b2_p)

    return out_p[:B, :num_classes]


# ----------------------------------------------------------------------------
# Deterministic parameter init (mirrors nn.Linear default: U(-1/sqrt(fan_in), +))
# ----------------------------------------------------------------------------
def init_params(key, input_size, hidden_size, num_classes):
    k1, k2, k3, k4 = jax.random.split(key, 4)
    bound1 = 1.0 / jnp.sqrt(jnp.float32(input_size))
    bound2 = 1.0 / jnp.sqrt(jnp.float32(hidden_size))
    w1 = jax.random.uniform(k1, (hidden_size, input_size), jnp.float32,
                            minval=-bound1, maxval=bound1)
    b1 = jax.random.uniform(k2, (hidden_size,), jnp.float32,
                            minval=-bound1, maxval=bound1)
    w2 = jax.random.uniform(k3, (num_classes, hidden_size), jnp.float32,
                            minval=-bound2, maxval=bound2)
    b2 = jax.random.uniform(k4, (num_classes,), jnp.float32,
                            minval=-bound2, maxval=bound2)
    return w1, b1, w2, b2


if __name__ == "__main__":
    # Module constants from the original script.
    input_size = 6920
    hidden_size = 5
    num_classes = 2
    batch = 2

    key = jax.random.PRNGKey(0)
    kx, kp = jax.random.split(key)

    x = jax.random.normal(kx, (batch, input_size), jnp.float32)
    w1, b1, w2, b2 = init_params(kp, input_size, hidden_size, num_classes)

    # One-time weight layout/padding, hoisted out of the per-call forward path.
    padded = prepare_params(w1, b1, w2, b2)
    padded = jax.block_until_ready(padded)
    w1_p, b1_p, w2_p, b2_p = padded

    out = neural_net_forward(x, w1_p, b1_p, w2_p, b2_p, num_classes=num_classes)
    out = jax.block_until_ready(out)

    # Pure-JAX reference check of the same math.
    ref = jnp.maximum(x @ w1.T + b1, 0.0) @ w2.T + b2
    assert out.shape == (batch, num_classes)
    assert jnp.allclose(out, ref, atol=1e-4, rtol=1e-4)

    print("KERNEL_OK")
</pallas_src>

<mosaic_0001>
module attributes {stable_mosaic.version = 11 : i64} {
  func.func @_mlp_kernel(%arg0: i32, %arg1: memref<8x7040xf32, #tpu.memory_space<vmem>>, %arg2: memref<8x7040xf32, #tpu.memory_space<vmem>>, %arg3: memref<1x8xf32, #tpu.memory_space<vmem>>, %arg4: memref<8x128xf32, #tpu.memory_space<vmem>>, %arg5: memref<1x128xf32, #tpu.memory_space<vmem>>, %arg6: memref<8x128xf32, #tpu.memory_space<vmem>>) attributes {dimension_semantics = [#tpu.dimension_semantics<parallel>], iteration_bounds = array<i64: 1>, scalar_prefetch = 0 : i64, scratch_operands = 0 : i64, tpu.core_type = #tpu.core_type<tc>, window_params = [{transform_indices = @transform_0, window_bounds = array<i64: 8, 7040>}, {pipeline_mode = #tpu.pipeline_mode<synchronous>, transform_indices = @transform_1, window_bounds = array<i64: 8, 7040>}, {pipeline_mode = #tpu.pipeline_mode<synchronous>, transform_indices = @transform_2, window_bounds = array<i64: 1, 8>}, {pipeline_mode = #tpu.pipeline_mode<synchronous>, transform_indices = @transform_3, window_bounds = array<i64: 8, 128>}, {pipeline_mode = #tpu.pipeline_mode<synchronous>, transform_indices = @transform_4, window_bounds = array<i64: 1, 128>}, {transform_indices = @transform_5, window_bounds = array<i64: 8, 128>}]} {
    %c0 = arith.constant 0 : index
    %c0_0 = arith.constant 0 : index
    %0 = vector.load %arg1[%c0, %c0_0] : memref<8x7040xf32, #tpu.memory_space<vmem>>, vector<8x7040xf32>
    %c0_1 = arith.constant 0 : index
    %c0_2 = arith.constant 0 : index
    %1 = vector.load %arg2[%c0_1, %c0_2] : memref<8x7040xf32, #tpu.memory_space<vmem>>, vector<8x7040xf32>
    %cst = arith.constant dense<0.000000e+00> : vector<8x8xf32>
    %2 = tpu.matmul %0, %1, %cst {dimension_numbers = #tpu.dot_dimension_numbers<[1], [1], [0], [0], [0, 0, 1, 0], [], []>} : vector<8x7040xf32>, vector<8x7040xf32>, vector<8x8xf32> -> vector<8x8xf32>
    %c0_3 = arith.constant 0 : index
    %c0_4 = arith.constant 0 : index
    %3 = vector.load %arg3[%c0_3, %c0_4] : memref<1x8xf32, #tpu.memory_space<vmem>>, vector<1x8xf32>
    %4 = vector.broadcast %3 : vector<1x8xf32> to vector<8x8xf32>
    %5 = arith.addf %2, %4 : vector<8x8xf32>
    %cst_5 = arith.constant 0.000000e+00 : f32
    %6 = vector.broadcast %cst_5 : f32 to vector<8x8xf32>
    %7 = arith.maximumf %5, %6 : vector<8x8xf32>
    %c0_6 = arith.constant 0 : index
    %c0_7 = arith.constant 0 : index
    %8 = vector.load %arg4[%c0_6, %c0_7] : memref<8x128xf32, #tpu.memory_space<vmem>>, vector<8x128xf32>
    %cst_8 = arith.constant dense<0.000000e+00> : vector<8x128xf32>
    %9 = tpu.matmul %7, %8, %cst_8 {dimension_numbers = #tpu.dot_dimension_numbers<[1], [0], [0], [1], [0, 0, 1, 1], [], []>} : vector<8x8xf32>, vector<8x128xf32>, vector<8x128xf32> -> vector<8x128xf32>
    %c0_9 = arith.constant 0 : index
    %c0_10 = arith.constant 0 : index
    %10 = vector.load %arg5[%c0_9, %c0_10] : memref<1x128xf32, #tpu.memory_space<vmem>>, vector<1x128xf32>
    %11 = vector.broadcast %10 : vector<1x128xf32> to vector<8x128xf32>
    %12 = arith.addf %9, %11 : vector<8x128xf32>
    %c0_11 = arith.constant 0 : index
    %c0_12 = arith.constant 0 : index
    %13 = vector.load %arg6[%c0_11, %c0_12] : memref<8x128xf32, #tpu.memory_space<vmem>>, vector<8x128xf32>
    tpu.vector_store %arg6[%c0_11, %c0_12], %12 {strides = array<i32>} : memref<8x128xf32, #tpu.memory_space<vmem>>, vector<8x128xf32>,
    return
  }
  func.func @transform_0(%arg0: i32) -> (i32, i32) {
    %c0_i32 = arith.constant 0 : i32
    %c0_i32_0 = arith.constant 0 : i32
    return %arg0, %c0_i32 : i32, i32
  }
  func.func @transform_1(%arg0: i32) -> (i32, i32) {
    %c0_i32 = arith.constant 0 : i32
    %c0_i32_0 = arith.constant 0 : i32
    %c0_i32_1 = arith.constant 0 : i32
    return %c0_i32, %c0_i32_0 : i32, i32
  }
  func.func @transform_2(%arg0: i32) -> (i32, i32) {
    %c0_i32 = arith.constant 0 : i32
    %c0_i32_0 = arith.constant 0 : i32
    %c0_i32_1 = arith.constant 0 : i32
    return %c0_i32, %c0_i32_0 : i32, i32
  }
  func.func @transform_3(%arg0: i32) -> (i32, i32) {
    %c0_i32 = arith.constant 0 : i32
    %c0_i32_0 = arith.constant 0 : i32
    %c0_i32_1 = arith.constant 0 : i32
    return %c0_i32, %c0_i32_0 : i32, i32
  }
  func.func @transform_4(%arg0: i32) -> (i32, i32) {
    %c0_i32 = arith.constant 0 : i32
    %c0_i32_0 = arith.constant 0 : i32
    %c0_i32_1 = arith.constant 0 : i32
    return %c0_i32, %c0_i32_0 : i32, i32
  }
  func.func @transform_5(%arg0: i32) -> (i32, i32) {
    %c0_i32 = arith.constant 0 : i32
    %c0_i32_0 = arith.constant 0 : i32
    return %arg0, %c0_i32 : i32, i32
  }
}

</mosaic_0001>

<bundles_post_ra>
// kernel: neural_net_forward.1
= control target key start
LH: loop header
LB: loop body
LE: loop exit
PB: predicated region body
PF: predicated region fallthrough
CT: control target
= control target key end

     0   :  { %vm2259_vm0 = vmmov 0   ;;  %vm2106_vm1 = vcmask 64512   ;;  %s2632_s1 = inlined_call_operand.vmem [shape: f32[8,7040], index: 1, kind: input, shape index: {}]   ;;  %s2633_s0 = inlined_call_operand.vmem [shape: f32[8,7040], index: 0, kind: input, shape index: {}]   ;;  %s2634_s3 = inlined_call_operand.vmem [shape: f32[8,128], index: 3, kind: input, shape index: {}]   ;;  %s2635_s2 = inlined_call_operand.vmem [shape: f32[1,8], index: 2, kind: input, shape index: {}]   ;;  %s2636_s4 = inlined_call_operand.vmem [shape: f32[1,128], index: 4, kind: input, shape index: {}]   ;;  %s2637_s5 = inlined_call_operand.vmem [shape: f32[8,128], index: 5, kind: output, shape index: {}]  }
   0x1   :  { %v76_v0 = vld [vmem:[%s2632_s1 + $0x8] sm:$0xff]  ;;  %v102_v1 = vld [vmem:[%s2632_s1 + $0xd8] sm:$0xff]  ;;  %v75_v2 = vld [vmem:[%s2632_s1] sm:$0xff] }
   0x2   :  { %137 = vmatprep.subr.mxu1 %v76_v0  ;;  %1047 = vmatprep.subr.mxu0 %v102_v1  ;;  %v101_v3 = vld [vmem:[%s2632_s1 + $0xd0] sm:$0xff]  ;;  %v21_v4 = vld [vmem:[%s2633_s0 + $0x8] sm:$0xff]  ;;  %v47_v5 = vld [vmem:[%s2633_s0 + $0xd8] sm:$0xff] }
   0x3   :  { %138 = vmatpush1.xpose.msra.mxu1 %v75_v2  ;;  %1048 = vmatpush1.xpose.msra.mxu0 %v101_v3  ;;  %v20_v6 = vld [vmem:[%s2633_s0] sm:$0xff]  ;;  %v46_v7 = vld [vmem:[%s2633_s0 + $0xd0] sm:$0xff]  ;;  %v104_v8 = vld [vmem:[%s2632_s1 + $0xe8] sm:$0xff] }
   0x4   :  { %201 = vmatprep.mubr.f32.mxu1 %v21_v4  ;;  %1111 = vmatprep.mubr.f32.mxu0 %v47_v5  ;;  %v103_v9 = vld [vmem:[%s2632_s1 + $0xe0] sm:$0xff]  ;;  %v78_v10 = vld [vmem:[%s2632_s1 + $0x18] sm:$0xff]  ;;  %v77_v11 = vld [vmem:[%s2632_s1 + $0x10] sm:$0xff] }
   0x5   :  { %1117 = vmatprep.subr.mxu0 %v104_v8  ;;  %207 = vmatprep.subr.mxu1 %v78_v10  ;;  %v23_v12 = vld [vmem:[%s2633_s0 + $0x18] sm:$0xff]  ;;  %v49_v13 = vld [vmem:[%s2633_s0 + $0xe8] sm:$0xff]  ;;  %v22_v16 = vld [vmem:[%s2633_s0 + $0x10] sm:$0xff] }
   0x6   :  { %202 = vmatmul.mubr.f32.vlgmr.msra.gmra.mrb[0].mxu1 %v20_v6  ;;  %1112 = vmatmul.mubr.f32.vlgmr.msra.gmra.mrb[0].mxu0 %v46_v7  ;;  %v106_v14 = vld [vmem:[%s2632_s1 + $0xf8] sm:$0xff]  ;;  %v80_v15 = vld [vmem:[%s2632_s1 + $0x28] sm:$0xff]  ;;  %v48_v17 = vld [vmem:[%s2633_s0 + $0xe0] sm:$0xff] }
   0x7   :  { %1118 = vmatpush1.xpose.msra.mxu0 %v103_v9  ;;  %208 = vmatpush1.xpose.msra.mxu1 %v77_v11  ;;  %v105_v18 = vld [vmem:[%s2632_s1 + $0xf0] sm:$0xff]  ;;  %v79_v19 = vld [vmem:[%s2632_s1 + $0x20] sm:$0xff]  ;;  %v25_v20 = vld [vmem:[%s2633_s0 + $0x28] sm:$0xff] }
   0x8   :  { %271 = vmatprep.mubr.f32.mxu1 %v23_v12  ;;  %1181 = vmatprep.mubr.f32.mxu0 %v49_v13  ;;  %v51_v21 = vld [vmem:[%s2633_s0 + $0xf8] sm:$0xff]  ;;  %v108_v22 = vld [vmem:[%s2632_s1 + $0x108] sm:$0xff]  ;;  %v24_v24 = vld [vmem:[%s2633_s0 + $0x20] sm:$0xff] }
   0x9   :  { %1187 = vmatprep.subr.mxu0 %v106_v14  ;;  %277 = vmatprep.subr.mxu1 %v80_v15  ;;  %v82_v23 = vld [vmem:[%s2632_s1 + $0x38] sm:$0xff]  ;;  %v50_v25 = vld [vmem:[%s2633_s0 + $0xf0] sm:$0xff]  ;;  %v107_v26 = vld [vmem:[%s2632_s1 + $0x100] sm:$0xff] }
   0xa   :  { %v81_v27 = vld [vmem:[%s2632_s1 + $0x30] sm:$0xff]  ;;  %v27_v28 = vld [vmem:[%s2633_s0 + $0x38] sm:$0xff]  ;;  %v53_v29 = vld [vmem:[%s2633_s0 + $0x108] sm:$0xff] }
   0xb   :  { %v110_v30 = vld [vmem:[%s2632_s1 + $0x118] sm:$0xff]  ;;  %v84_v31 = vld [vmem:[%s2632_s1 + $0x48] sm:$0xff]  ;;  %v26_v32 = vld [vmem:[%s2633_s0 + $0x30] sm:$0xff] }
   0xc   :  { %v52_v33 = vld [vmem:[%s2633_s0 + $0x100] sm:$0xff]  ;;  %v109_v34 = vld [vmem:[%s2632_s1 + $0x110] sm:$0xff]  ;;  %v29_v36 = vld [vmem:[%s2633_s0 + $0x48] sm:$0xff] }
   0xd   :  { %v83_v35 = vld [vmem:[%s2632_s1 + $0x40] sm:$0xff]  ;;  %v55_v37 = vld [vmem:[%s2633_s0 + $0x118] sm:$0xff]  ;;  %v112_v38 = vld [vmem:[%s2632_s1 + $0x128] sm:$0xff] }
   0xe   :  { %272 = vmatmul.mubr.f32.vlgmr.msra.gmra.mrb[0].mxu1 %v22_v16  ;;  %1182 = vmatmul.mubr.f32.vlgmr.msra.gmra.mrb[0].mxu0 %v48_v17  ;;  %v86_v39 = vld [vmem:[%s2632_s1 + $0x58] sm:$0xff]  ;;  %v28_v40 = vld [vmem:[%s2633_s0 + $0x40] sm:$0xff]  ;;  %v54_v41 = vld [vmem:[%s2633_s0 + $0x110] sm:$0xff] }
   0xf   :  { %1188 = vmatpush1.xpose.msra.mxu0 %v105_v18  ;;  %278 = vmatpush1.xpose.msra.mxu1 %v79_v19  ;;  %v111_v42 = vld [vmem:[%s2632_s1 + $0x120] sm:$0xff]  ;;  %v85_v43 = vld [vmem:[%s2632_s1 + $0x50] sm:$0xff]  ;;  %v31_v44 = vld [vmem:[%s2633_s0 + $0x58] sm:$0xff] }
  0x10   :  { %341 = vmatprep.mubr.f32.mxu1 %v25_v20  ;;  %1251 = vmatprep.mubr.f32.mxu0 %v51_v21  ;;  %v57_v45 = vld [vmem:[%s2633_s0 + $0x128] sm:$0xff]  ;;  %v114_v46 = vld [vmem:[%s2632_s1 + $0x138] sm:$0xff]  ;;  %v30_v48 = vld [vmem:[%s2633_s0 + $0x50] sm:$0xff] }
  0x11   :  { %1257 = vmatprep.subr.mxu0 %v108_v22  ;;  %347 = vmatprep.subr.mxu1 %v82_v23  ;;  %v88_v47 = vld [vmem:[%s2632_s1 + $0x68] sm:$0xff]  ;;  %v56_v49 = vld [vmem:[%s2633_s0 + $0x120] sm:$0xff]  ;;  %v113_v50 = vld [vmem:[%s2632_s1 + $0x130] sm:$0xff] }
  0x12   :  { %v87_v51 = vld [vmem:[%s2632_s1 + $0x60] sm:$0xff]  ;;  %v33_v52 = vld [vmem:[%s2633_s0 + $0x68] sm:$0xff]  ;;  %v59_v53 = vld [vmem:[%s2633_s0 + $0x138] sm:$0xff] }
  0x13   :  { %v116_v54 = vld [vmem:[%s2632_s1 + $0x148] sm:$0xff]  ;;  %v90_v55 = vld [vmem:[%s2632_s1 + $0x78] sm:$0xff]  ;;  %v32_v56 = vld [vmem:[%s2633_s0 + $0x60] sm:$0xff] }
  0x14   :  { %v58_v57 = vld [vmem:[%s2633_s0 + $0x130] sm:$0xff]  ;;  %v115_v58 = vld [vmem:[%s2632_s1 + $0x140] sm:$0xff]  ;;  %v35_v60 = vld [vmem:[%s2633_s0 + $0x78] sm:$0xff] }
  0x15   :  { %v89_v59 = vld [vmem:[%s2632_s1 + $0x70] sm:$0xff]  ;;  %v61_v61 = vld [vmem:[%s2633_s0 + $0x148] sm:$0xff]  ;;  %v118_v62 = vld [vmem:[%s2632_s1 + $0x158] sm:$0xff] }
  0x16   :  { %342 = vmatmul.mubr.f32.vlgmr.msra.gmra.mrb[0].mxu1 %v24_v24  ;;  %1252 = vmatmul.mubr.f32.vlgmr.msra.gmra.mrb[0].mxu0 %v50_v25  ;;  %v92_v63 = vld [vmem:[%s2632_s1 + $0x88] sm:$0xff]  ;;  %v34_v0 = vld [vmem:[%s2633_s0 + $0x70] sm:$0xff]  ;;  %v60_v1 = vld [vmem:[%s2633_s0 + $0x140] sm:$0xff] }
  0x17   :  { %1258 = vmatpush1.xpose.msra.mxu0 %v107_v26  ;;  %348 = vmatpush1.xpose.msra.mxu1 %v81_v27  ;;  %v117_v2 = vld [vmem:[%s2632_s1 + $0x150] sm:$0xff]  ;;  %v91_v3 = vld [vmem:[%s2632_s1 + $0x80] sm:$0xff]  ;;  %v37_v4 = vld [vmem:[%s2633_s0 + $0x88] sm:$0xff] }
  0x18   :  { %411 = vmatprep.mubr.f32.mxu1 %v27_v28  ;;  %1321 = vmatprep.mubr.f32.mxu0 %v53_v29  ;;  %v63_v5 = vld [vmem:[%s2633_s0 + $0x158] sm:$0xff]  ;;  %v120_v6 = vld [vmem:[%s2632_s1 + $0x168] sm:$0xff]  ;;  %v36_v8 = vld [vmem:[%s2633_s0 + $0x80] sm:$0xff] }
  0x19   :  { %1327 = vmatprep.subr.mxu0 %v110_v30  ;;  %417 = vmatprep.subr.mxu1 %v84_v31  ;;  %v94_v7 = vld [vmem:[%s2632_s1 + $0x98] sm:$0xff]  ;;  %v62_v9 = vld [vmem:[%s2633_s0 + $0x150] sm:$0xff]  ;;  %v119_v10 = vld [vmem:[%s2632_s1 + $0x160] sm:$0xff] }
  0x1a   :  { %v93_v11 = vld [vmem:[%s2632_s1 + $0x90] sm:$0xff]  ;;  %v39_v12 = vld [vmem:[%s2633_s0 + $0x98] sm:$0xff]  ;;  %v65_v13 = vld [vmem:[%s2633_s0 + $0x168] sm:$0xff] }
  0x1b   :  { %v122_v14 = vld [vmem:[%s2632_s1 + $0x178] sm:$0xff]  ;;  %v96_v15 = vld [vmem:[%s2632_s1 + $0xa8] sm:$0xff]  ;;  %v38_v16 = vld [vmem:[%s2633_s0 + $0x90] sm:$0xff] }
  0x1c   :  { %v64_v17 = vld [vmem:[%s2633_s0 + $0x160] sm:$0xff]  ;;  %v121_v18 = vld [vmem:[%s2632_s1 + $0x170] sm:$0xff]  ;;  %v41_v20 = vld [vmem:[%s2633_s0 + $0xa8] sm:$0xff] }
  0x1d   :  { %v95_v19 = vld [vmem:[%s2632_s1 + $0xa0] sm:$0xff]  ;;  %v67_v21 = vld [vmem:[%s2633_s0 + $0x178] sm:$0xff]  ;;  %v124_v22 = vld [vmem:[%s2632_s1 + $0x188] sm:$0xff] }
  0x1e   :  { %412 = vmatmul.mubr.f32.vlgmr.msra.gmra.mrb[0].mxu1 %v26_v32  ;;  %1322 = vmatmul.mubr.f32.vlgmr.msra.gmra.mrb[0].mxu0 %v52_v33  ;;  %v98_v23 = vld [vmem:[%s2632_s1 + $0xb8] sm:$0xff]  ;;  %v40_v24 = vld [vmem:[%s2633_s0 + $0xa0] sm:$0xff]  ;;  %v66_v25 = vld [vmem:[%s2633_s0 + $0x170] sm:$0xff] }
  0x1f   :  { %1328 = vmatpush1.xpose.msra.mxu0 %v109_v34  ;;  %418 = vmatpush1.xpose.msra.mxu1 %v83_v35  ;;  %v123_v26 = vld [vmem:[%s2632_s1 + $0x180] sm:$0xff]  ;;  %v97_v27 = vld [vmem:[%s2632_s1 + $0xb0] sm:$0xff]  ;;  %v43_v28 = vld [vmem:[%s2633_s0 + $0xb8] sm:$0xff] }
  0x20   :  { %481 = vmatprep.mubr.f32.mxu1 %v29_v36  ;;  %1391 = vmatprep.mubr.f32.mxu0 %v55_v37  ;;  %v69_v29 = vld [vmem:[%s2633_s0 + $0x188] sm:$0xff]  ;;  %v126_v30 = vld [vmem:[%s2632_s1 + $0x198] sm:$0xff]  ;;  %v42_v32 = vld [vmem:[%s2633_s0 + $0xb0] sm:$0xff] }
  0x21   :  { %1397 = vmatprep.subr.mxu0 %v112_v38  ;;  %487 = vmatprep.subr.mxu1 %v86_v39  ;;  %v100_v31 = vld [vmem:[%s2632_s1 + $0xc8] sm:$0xff]  ;;  %v68_v33 = vld [vmem:[%s2633_s0 + $0x180] sm:$0xff]  ;;  %v125_v34 = vld [vmem:[%s2632_s1 + $0x190] sm:$0xff]  ;;  %v2258_v39 = vmov 0.0  }
  0x22   :  { %v99_v35 = vld [vmem:[%s2632_s1 + $0xc0] sm:$0xff]  ;;  %v45_v36 = vld [vmem:[%s2633_s0 + $0xc8] sm:$0xff]  ;;  %v71_v37 = vld [vmem:[%s2633_s0 + $0x198] sm:$0xff] }
  0x23   :  { %v128_v38 = vld [vmem:[%s2632_s1 + $0x1a8] sm:$0xff] }
  0x26   :  { %482 = vmatmul.mubr.f32.vlgmr.msra.gmra.mrb[0].mxu1 %v28_v40  ;;  %1392 = vmatmul.mubr.f32.vlgmr.msra.gmra.mrb[0].mxu0 %v54_v41  ;;  %v44_v40 = vld [vmem:[%s2633_s0 + $0xc0] sm:$0xff]  ;;  %v70_v41 = vld [vmem:[%s2633_s0 + $0x190] sm:$0xff] }
  0x27   :  { %1398 = vmatpush1.xpose.msra.mxu0 %v111_v42  ;;  %488 = vmatpush1.xpose.msra.mxu1 %v85_v43  ;;  %v127_v42 = vld [vmem:[%s2632_s1 + $0x1a0] sm:$0xff]  ;;  %v73_v43 = vld [vmem:[%s2633_s0 + $0x1a8] sm:$0xff] }
  0x28   :  { %551 = vmatprep.mubr.f32.mxu1 %v31_v44  ;;  %1461 = vmatprep.mubr.f32.mxu0 %v57_v45  ;;  %v72_v44 = vld [vmem:[%s2633_s0 + $0x1a0] sm:$0xff]  ;;  %v129_v45 = vld [vmem:[%s2632_s1 + $0x1b0] sm:$0xff] }
  0x29   :  { %1467 = vmatprep.subr.mxu0 %v114_v46  ;;  %557 = vmatprep.subr.mxu1 %v88_v47  ;;  %v74_v46 = vld [vmem:[%s2633_s0 + $0x1b0] sm:$0xff]  ;;  %v2098_v47 = vld [vmem:[%s2634_s3] sm:$0xff] }
  0x2e   :  { %552 = vmatmul.mubr.f32.vlgmr.msra.gmra.mrb[0].mxu1 %v30_v48  ;;  %1462 = vmatmul.mubr.f32.vlgmr.msra.gmra.mrb[0].mxu0 %v56_v49 }
  0x2f   :  { %1468 = vmatpush1.xpose.msra.mxu0 %v113_v50  ;;  %558 = vmatpush1.xpose.msra.mxu1 %v87_v51  ;;  %v2185_v50 = vld [vmem:[%s2635_s2] ss:$0 sm:$0xff] }
  0x30   :  { %621 = vmatprep.mubr.f32.mxu1 %v33_v52  ;;  %1531 = vmatprep.mubr.f32.mxu0 %v59_v53 }
  0x31   :  { %1537 = vmatprep.subr.mxu0 %v116_v54  ;;  %627 = vmatprep.subr.mxu1 %v90_v55 }
  0x36   :  { %622 = vmatmul.mubr.f32.vlgmr.msra.gmra.mrb[0].mxu1 %v32_v56  ;;  %1532 = vmatmul.mubr.f32.vlgmr.msra.gmra.mrb[0].mxu0 %v58_v57  ;;  %v2186_v56 = vld [vmem:[%s2636_s4] ss:$0 sm:$0xff] }
  0x37   :  { %1538 = vmatpush1.xpose.msra.mxu0 %v115_v58  ;;  %628 = vmatpush1.xpose.msra.mxu1 %v89_v59 }
  0x38   :  { %691 = vmatprep.mubr.f32.mxu1 %v35_v60  ;;  %1601 = vmatprep.mubr.f32.mxu0 %v61_v61 }
  0x39   :  { %1607 = vmatprep.subr.mxu0 %v118_v62  ;;  %697 = vmatprep.subr.mxu1 %v92_v63 }
  0x3e   :  { %692 = vmatmul.mubr.f32.vlgmr.msra.gmra.mrb[0].mxu1 %v34_v0  ;;  %1602 = vmatmul.mubr.f32.vlgmr.msra.gmra.mrb[0].mxu0 %v60_v1 }
  0x3f   :  { %1608 = vmatpush1.xpose.msra.mxu0 %v117_v2  ;;  %698 = vmatpush1.xpose.msra.mxu1 %v91_v3 }
  0x40   :  { %761 = vmatprep.mubr.f32.mxu1 %v37_v4  ;;  %1671 = vmatprep.mubr.f32.mxu0 %v63_v5 }
  0x41   :  { %1677 = vmatprep.subr.mxu0 %v120_v6  ;;  %767 = vmatprep.subr.mxu1 %v94_v7 }
  0x46   :  { %762 = vmatmul.mubr.f32.vlgmr.msra.gmra.mrb[0].mxu1 %v36_v8  ;;  %1672 = vmatmul.mubr.f32.vlgmr.msra.gmra.mrb[0].mxu0 %v62_v9 }
  0x47   :  { %1678 = vmatpush1.xpose.msra.mxu0 %v119_v10  ;;  %768 = vmatpush1.xpose.msra.mxu1 %v93_v11 }
  0x48   :  { %831 = vmatprep.mubr.f32.mxu1 %v39_v12  ;;  %1741 = vmatprep.mubr.f32.mxu0 %v65_v13 }
  0x49   :  { %1747 = vmatprep.subr.mxu0 %v122_v14  ;;  %837 = vmatprep.subr.mxu1 %v96_v15 }
  0x4e   :  { %832 = vmatmul.mubr.f32.vlgmr.msra.gmra.mrb[0].mxu1 %v38_v16  ;;  %1742 = vmatmul.mubr.f32.vlgmr.msra.gmra.mrb[0].mxu0 %v64_v17 }
  0x4f   :  { %1748 = vmatpush1.xpose.msra.mxu0 %v121_v18  ;;  %838 = vmatpush1.xpose.msra.mxu1 %v95_v19 }
  0x50   :  { %901 = vmatprep.mubr.f32.mxu1 %v41_v20  ;;  %1811 = vmatprep.mubr.f32.mxu0 %v67_v21 }
  0x51   :  { %1817 = vmatprep.subr.mxu0 %v124_v22  ;;  %907 = vmatprep.subr.mxu1 %v98_v23 }
  0x56   :  { %902 = vmatmul.mubr.f32.vlgmr.msra.gmra.mrb[0].mxu1 %v40_v24  ;;  %1812 = vmatmul.mubr.f32.vlgmr.msra.gmra.mrb[0].mxu0 %v66_v25 }
  0x57   :  { %1818 = vmatpush1.xpose.msra.mxu0 %v123_v26  ;;  %908 = vmatpush1.xpose.msra.mxu1 %v97_v27 }
  0x58   :  { %971 = vmatprep.mubr.f32.mxu1 %v43_v28  ;;  %1881 = vmatprep.mubr.f32.mxu0 %v69_v29 }
  0x59   :  { %1887 = vmatprep.subr.mxu0 %v126_v30  ;;  %977 = vmatprep.subr.mxu1 %v100_v31 }
  0x5e   :  { %972 = vmatmul.mubr.f32.vlgmr.msra.gmra.mrb[0].mxu1 %v42_v32  ;;  %1882 = vmatmul.mubr.f32.vlgmr.msra.gmra.mrb[0].mxu0 %v68_v33 }
  0x5f   :  { %1888 = vmatpush1.xpose.msra.mxu0 %v125_v34  ;;  %978 = vmatpush1.xpose.msra.mxu1 %v99_v35 }
  0x60   :  { %1041 = vmatprep.mubr.f32.mxu1 %v45_v36  ;;  %1951 = vmatprep.mubr.f32.mxu0 %v71_v37 }
  0x61   :  { %1957 = vmatprep.subr.mxu0 %v128_v38  ;;  %2197 = vmatprep.subr.mxu1 %v2258_v39 }
  0x66   :  { %1042 = vmatmul.mubr.f32.vlgmr.msra.gmra.mrb[0].mxu1 %v44_v40  ;;  %1952 = vmatmul.mubr.f32.vlgmr.msra.gmra.mrb[0].mxu0 %v70_v41 }
  0x67   :  { %1958 = vmatpush1.xpose.msra.mxu0 %v127_v42  ;;  %2021 = vmatprep.mubr.f32.mxu0 %v73_v43 }
  0x68   :  { %2192 = vmatprep.subr.mxu0 %v2258_v39  ;;  %2199 = vmatprep.mubr.msk.f32.mxu1 %vm2259_vm0, %v2258_v39 }
  0x69   :  { %2198 = vmatpush3.msra.mxu1 %v2098_v47 }
  0x6e   :  { %2022 = vmatmul.mubr.f32.vlgmr.msra.gmra.mrb[0].mxu0 %v72_v44 }
  0x6f   :  { %2193 = vmatpush3.xpose.msra.mxu0 %v129_v45  ;;  %2194 = vmatprep.mubr.msk.f32.mxu0 %vm2259_vm0, %v2258_v39 }
  0x76   :  { %2195 = vmatmul.mubr.f32.vlgmr.msra.gmra.mrb[0].mxu0 %v74_v46 }
 0x139   :  { %v1043_v48 = vpop.f32.mrb[0].mxu1 }
 0x13a   :  { %v1045_v49 = vpop.f32.mrb[1].mxu1  ;;  %v2202_v51 = vadd.f32 %v2185_v50, %v1043_v48 }
 0x149   :  { %v2093_v52 = vpop.f32.mrb[0].mxu0 }
 0x14a   :  { %v2203_v53 = vadd.f32 %v2202_v51, %v2093_v52  ;;  %v2196_v54 = vpop.f32.mrb[1].mxu0 }
 0x14c   :  { %v2097_v55 = vmax.f32 %v2203_v53, 0.0 }
 0x14e   :  { %2200 = vmatmul.mubr.msk.f32.vlgmr.msra.gmra.mrb[2].mxu1 %vm2106_vm1, %v2097_v55 }
 0x221   :  { %v2176_v57 = vpop.f32.mrb[2].mxu1 }
 0x222   :  { %v2177_v58 = vadd.f32 %v2186_v56, %v2176_v57  ;;  %v2201_v59 = vpop.f32.mrb[3].mxu1 }
 0x224   :  { %2180 = vst [vmem:[%s2637_s5] sm:$0xff] %v2177_v58 }

</bundles_post_ra>
